<compile_context>
chip_gen: v5e
topology: v5e:2x2
jax: 0.10.0
libtpu: 0.0.40
codegen_flags: <defaults>
</compile_context>

<pallas_src>
import functools

import jax
import jax.numpy as jnp
from jax.experimental import pallas as pl
from jax.experimental.pallas import tpu as pltpu

LANES = 1024          # lane-dense last dim (multiple of 128)
MAX_BLOCK_ROWS = 512  # 512 x 1024 x 4B = 2 MiB per f32 tile


def _round_up(a, b):
    return (a + b - 1) // b * b


def _lsq_kernel(thd_neg, thd_pos, min_s, s_ref, x_ref, o_ref):
    """Tiled elementwise LSQ quantize: o = round(clip(x/s, lo, hi)) * s."""
    s = jnp.maximum(s_ref[0], min_s)          # forward()'s min_s clamp
    inv_s = 1.0 / s                           # scalar recip once; per-element mul on VPU
    x = x_ref[...].astype(jnp.float32)
    xq = jnp.clip(x * inv_s, thd_neg, thd_pos)
    x_int = jnp.round(xq)                     # half-to-even, same as torch.round
    o_ref[...] = (x_int * s).astype(o_ref.dtype)


@functools.partial(jax.jit, static_argnames=("bit", "all_positive", "symmetric"))
def lsq_weight_quantize(x, s, bit=8, all_positive=False, symmetric=False):
    """JAX wrapper reproducing LSQ_weight_quantizer_1.forward (int_flag=False)."""
    if all_positive:
        thd_neg, thd_pos = 0, 2 ** bit - 1
    elif symmetric:
        thd_neg, thd_pos = -(2 ** (bit - 1)) + 2, 2 ** (bit - 1) - 2
    else:
        thd_neg, thd_pos = -(2 ** (bit - 1)), 2 ** (bit - 1) - 1

    orig_shape = x.shape
    orig_dtype = x.dtype
    total = x.size

    # Lane-dense slab independent of the original (O, I, kh, kw) layout.
    rows = pl.cdiv(total, LANES)
    block_rows = min(MAX_BLOCK_ROWS, _round_up(rows, 8))
    rows_padded = _round_up(rows, block_rows)
    padded_total = rows_padded * LANES

    xf = x.reshape(-1).astype(jnp.float32)
    if padded_total != total:
        xf = jnp.pad(xf, (0, padded_total - total))
    x2 = xf.reshape(rows_padded, LANES)

    s_arr = jnp.asarray(s, jnp.float32).reshape(1)

    kernel = functools.partial(_lsq_kernel, float(thd_neg), float(thd_pos), 1e-7)

    out2 = pl.pallas_call(
        kernel,
        out_shape=jax.ShapeDtypeStruct(x2.shape, x2.dtype),
        grid_spec=pltpu.PrefetchScalarGridSpec(
            num_scalar_prefetch=1,                 # s -> SMEM
            grid=(rows_padded // block_rows,),
            in_specs=[pl.BlockSpec((block_rows, LANES), lambda i, s_ref: (i, 0))],
            out_specs=pl.BlockSpec((block_rows, LANES), lambda i, s_ref: (i, 0)),
        ),
        compiler_params=pltpu.CompilerParams(
            dimension_semantics=("parallel",),     # independent tiles; megacore-shardable
        ),
        input_output_aliases={1: 0},               # reuse the padded temp buffer for output
        cost_estimate=pl.CostEstimate(
            flops=5 * padded_total,
            transcendentals=0,
            bytes_accessed=2 * padded_total * x2.dtype.itemsize,
        ),
    )(s_arr, x2)

    # TODO(synk): add_noise path (noise_scale != 0) and int_flag=True return
    # tuple not implemented; module defaults never exercise them in forward().
    return out2.reshape(-1)[:total].reshape(orig_shape).astype(orig_dtype)


if __name__ == "__main__":
    key = jax.random.PRNGKey(0)
    # Weight-like tensor (out_ch=2, in_ch=4, kh=16, kw=16), deterministic.
    x = jax.random.normal(key, (2, 4, 16, 16), dtype=jnp.float32)
    s = jnp.float32(0.3)
    bit = 8

    y = lsq_weight_quantize(x, s, bit=bit)
    y = jax.block_until_ready(y)

    # Pure-JAX reference (same math as the kernel: x * (1/s) then clamp/round).
    thd_neg, thd_pos = -(2 ** (bit - 1)), 2 ** (bit - 1) - 1
    s_eff = jnp.maximum(s, 1e-7)
    ref = jnp.round(jnp.clip(x * (1.0 / s_eff), thd_neg, thd_pos)) * s_eff

    assert y.shape == x.shape and y.dtype == x.dtype
    assert jnp.allclose(y, ref, atol=1e-5), "kernel output mismatch vs reference"

    print("KERNEL_OK")
</pallas_src>

<mosaic_0001>
module attributes {stable_mosaic.version = 11 : i64} {
  func.func @_lsq_kernel(%arg0: i32, %arg1: memref<1xf32, #tpu.memory_space<smem>>, %arg2: memref<8x1024xf32, #tpu.memory_space<vmem>>, %arg3: memref<8x1024xf32, #tpu.memory_space<vmem>>) attributes {dimension_semantics = [#tpu.dimension_semantics<parallel>], iteration_bounds = array<i64: 1>, scalar_prefetch = 1 : i64, scratch_operands = 0 : i64, tpu.core_type = #tpu.core_type<tc>, window_params = [{transform_indices = @transform_0, window_bounds = array<i64: 8, 1024>}, {transform_indices = @transform_1, window_bounds = array<i64: 8, 1024>}]} {
    %c0 = arith.constant 0 : index
    %0 = memref.load %arg1[%c0] : memref<1xf32, #tpu.memory_space<smem>>
    %cst = arith.constant 1.000000e-07 : f32
    %1 = arith.maximumf %0, %cst : f32
    %cst_0 = arith.constant 1.000000e+00 : f32
    %2 = arith.divf %cst_0, %1 : f32
    %c0_1 = arith.constant 0 : index
    %c0_2 = arith.constant 0 : index
    %3 = vector.load %arg2[%c0_1, %c0_2] : memref<8x1024xf32, #tpu.memory_space<vmem>>, vector<8x1024xf32>
    %4 = vector.broadcast %2 : f32 to vector<8x1024xf32>
    %5 = arith.mulf %3, %4 : vector<8x1024xf32>
    %cst_3 = arith.constant -1.280000e+02 : f32
    %cst_4 = arith.constant 1.270000e+02 : f32
    %6 = vector.broadcast %cst_3 : f32 to vector<8x1024xf32>
    %7 = arith.maximumf %6, %5 : vector<8x1024xf32>
    %8 = vector.broadcast %cst_4 : f32 to vector<8x1024xf32>
    %9 = arith.minimumf %8, %7 : vector<8x1024xf32>
    %10 = math.roundeven %9 : vector<8x1024xf32>
    %11 = vector.broadcast %1 : f32 to vector<8x1024xf32>
    %12 = arith.mulf %10, %11 : vector<8x1024xf32>
    %c0_5 = arith.constant 0 : index
    %c0_6 = arith.constant 0 : index
    %13 = vector.load %arg3[%c0_5, %c0_6] : memref<8x1024xf32, #tpu.memory_space<vmem>>, vector<8x1024xf32>
    tpu.vector_store %arg3[%c0_5, %c0_6], %12 {strides = array<i32>} : memref<8x1024xf32, #tpu.memory_space<vmem>>, vector<8x1024xf32>,
    return
  }
  func.func @transform_0(%arg0: i32, %arg1: memref<1xf32, #tpu.memory_space<smem>>) -> (i32, i32) {
    %c0_i32 = arith.constant 0 : i32
    %c0_i32_0 = arith.constant 0 : i32
    return %arg0, %c0_i32 : i32, i32
  }
  func.func @transform_1(%arg0: i32, %arg1: memref<1xf32, #tpu.memory_space<smem>>) -> (i32, i32) {
    %c0_i32 = arith.constant 0 : i32
    %c0_i32_0 = arith.constant 0 : i32
    return %arg0, %c0_i32 : i32, i32
  }
}

</mosaic_0001>

<bundles_post_ra>
// kernel: lsq_weight_quantize.1
= control target key start
LH: loop header
LB: loop body
LE: loop exit
PB: predicated region body
PF: predicated region fallthrough
CT: control target
= control target key end

     0   :  { %s159_s9 = smov 1e-07   ;;  %s325_s0 = inlined_call_operand.<no memory space> [shape: f32[1], index: 0, kind: input, shape index: {}]   ;;  %s326_s1 = inlined_call_operand.vmem [shape: f32[8,1024], index: 1, kind: input, shape index: {}, may-alias: {1,2}]   ;;  %s327_s2 = inlined_call_operand.vmem [shape: f32[8,1024], index: 2, kind: output, shape index: {}, may-alias: {1,2}]  }
   0x1   :  { %s11_s12 = smax.f32 %s159_s9, %s325_s0  ;;  %v28_v11 = vld [vmem:[%s326_s1] sm:$0xff]  ;;  %v29_v12 = vld [vmem:[%s326_s1 + $0x8] sm:$0xff]  ;;  %v30_v13 = vld [vmem:[%s326_s1 + $0x10] sm:$0xff] }
   0x2   :  { %v178_v0 = vstv %s11_s12  ;;  %v31_v14 = vld [vmem:[%s326_s1 + $0x18] sm:$0xff]  ;;  %v32_v15 = vld [vmem:[%s326_s1 + $0x20] sm:$0xff]  ;;  %v33_v16 = vld [vmem:[%s326_s1 + $0x28] sm:$0xff] }
   0x3   :  { %157 = vrcp.f32 %v178_v0  ;;  %v24_v3 = vand.u32 2147483648, %v178_v0  ;;  %vm18_vm0 = vweird.f32 %v178_v0  ;;  %v22_v5 = vand.u32 2147483647, %v178_v0  ;;  %v34_v17 = vld [vmem:[%s326_s1 + $0x30] sm:$0xff]  ;;  %v35_v18 = vld [vmem:[%s326_s1 + $0x38] sm:$0xff] }
   0x5   :  { %v25_v7 = vor.u32 1.1754944e-38, %v24_v3  ;;  %vm23_vm3 = vcmp.eq.f32.partialorder %v22_v5, 8.507059e+37 }
   0x9   :  { %v158_v1 = vpop.eup %157 }
   0xa   :  { %v14_v2 = vmul.f32 %v158_v1, %v178_v0  ;;  %vm19_vm1 = vweird.f32 %v158_v1 }
   0xb   :  { %vm20_vm2 = vmor %vm18_vm0, %vm19_vm1 }
   0xc   :  { %v15_v4 = vsub.f32 1.0, %v14_v2 }
   0xe   :  { %v16_v6 = vmul.f32 %v158_v1, %v15_v4 }
  0x10   :  { %v17_v8 = vadd.f32 %v158_v1, %v16_v6 }
  0x12   :  { %v21_v9 = vsel %vm20_vm2, %v158_v1, %v17_v8 }
  0x13   :  { %v26_v10 = vsel %vm23_vm3, %v25_v7, %v21_v9 }
  0x14   :  { %90 = vpush %v26_v10 }
  0x45   :  { %s91_s22 = spop %90 }
  0x46   :  { %v36_v19 = vstv %s91_s22 }
  0x47   :  { %v37_v20 = vmul.f32 %v36_v19, %v28_v11  ;;  %v38_v21 = vmul.f32 %v36_v19, %v29_v12  ;;  %v39_v22 = vmul.f32 %v36_v19, %v30_v13  ;;  %v40_v23 = vmul.f32 %v36_v19, %v31_v14 }
  0x48   :  { %v41_v24 = vmul.f32 %v36_v19, %v32_v15  ;;  %v42_v25 = vmul.f32 %v36_v19, %v33_v16  ;;  %v43_v26 = vmul.f32 %v36_v19, %v34_v17  ;;  %v44_v27 = vmul.f32 %v36_v19, %v35_v18 }
  0x49   :  { %v45_v28 = vmax.f32 %v37_v20, -128.0  ;;  %v46_v29 = vmax.f32 %v38_v21, -128.0  ;;  %v47_v30 = vmax.f32 %v39_v22, -128.0  ;;  %v48_v31 = vmax.f32 %v40_v23, -128.0 }
  0x4a   :  { %v49_v32 = vmax.f32 %v41_v24, -128.0  ;;  %v50_v33 = vmax.f32 %v42_v25, -128.0  ;;  %v51_v34 = vmax.f32 %v43_v26, -128.0  ;;  %v52_v35 = vmax.f32 %v44_v27, -128.0 }
  0x4b   :  { %v209_v36 = vmin.f32 %v45_v28, 127.0  ;;  %v211_v37 = vmin.f32 %v46_v29, 127.0  ;;  %v213_v38 = vmin.f32 %v47_v30, 127.0  ;;  %v215_v39 = vmin.f32 %v48_v31, 127.0 }
  0x4c   :  { %v217_v40 = vmin.f32 %v49_v32, 127.0  ;;  %v219_v41 = vmin.f32 %v50_v33, 127.0  ;;  %v224_v45 = vmin.f32 %v51_v34, 127.0  ;;  %v226_v46 = vmin.f32 %v52_v35, 127.0 }
  0x4d   :  { %v92_v42 = vand.u32 2147483647, %v209_v36  ;;  %v94_v43 = vcvt.f32.s32 %v209_v36  ;;  %v100_v44 = vand.u32 2147483647, %v211_v37  ;;  %v102_v47 = vcvt.f32.s32 %v211_v37 }
  0x4e   :  { %v110_v48 = vcvt.f32.s32 %v213_v38  ;;  %v97_v50 = vand.u32 2147483648, %v209_v36  ;;  %v105_v51 = vand.u32 2147483648, %v211_v37  ;;  %v108_v52 = vand.u32 2147483647, %v213_v38 }
  0x4f   :  { %v95_v49 = vcvt.s32.f32 %v94_v43  ;;  %vm233_vm4 = vcmp.lt.f32.partialorder %v92_v42, 8388608.0  ;;  %vm237_vm5 = vcmp.lt.f32.partialorder %v100_v44, 8388608.0  ;;  %v103_v55 = vcvt.s32.f32 %v102_v47 }
  0x50   :  { %v111_v56 = vcvt.s32.f32 %v110_v48  ;;  %v116_v58 = vand.u32 2147483647, %v215_v39  ;;  %v118_v59 = vcvt.f32.s32 %v215_v39  ;;  %v124_v60 = vand.u32 2147483647, %v217_v40 }
  0x51   :  { %v96_v57 = vand.u32 2147483647, %v95_v49  ;;  %v104_v61 = vand.u32 2147483647, %v103_v55  ;;  %v113_v63 = vand.u32 2147483648, %v213_v38  ;;  %v126_v1 = vcvt.f32.s32 %v217_v40 }
  0x52   :  { %v112_v62 = vand.u32 2147483647, %v111_v56  ;;  %vm246_vm6 = vcmp.lt.f32.partialorder %v108_v52, 8388608.0  ;;  %v119_v4 = vcvt.s32.f32 %v118_v59  ;;  %v121_v5 = vand.u32 2147483648, %v215_v39 }
  0x53   :  { %v98_v2 = vor.u32 %v97_v50, %v96_v57  ;;  %v106_v6 = vor.u32 %v105_v51, %v104_v61  ;;  %v127_v8 = vcvt.s32.f32 %v126_v1  ;;  %v132_v9 = vand.u32 2147483647, %v219_v41 }
  0x54   :  { %v114_v7 = vor.u32 %v113_v63, %v112_v62  ;;  %vm252_vm7 = vcmp.lt.f32.partialorder %v116_v58, 8388608.0  ;;  %v120_v11 = vand.u32 2147483647, %v119_v4  ;;  %vm256_vm8 = vcmp.lt.f32.partialorder %v124_v60, 8388608.0 }
  0x55   :  { %v134_v13 = vcvt.f32.s32 %v219_v41  ;;  %v99_v14 = vsel %vm233_vm4, %v98_v2, %v209_v36  ;;  %v128_v15 = vand.u32 2147483647, %v127_v8  ;;  %v129_v16 = vand.u32 2147483648, %v217_v40 }
  0x56   :  { %v137_v17 = vand.u32 2147483648, %v219_v41  ;;  %v107_v18 = vsel %vm237_vm5, %v106_v6, %v211_v37  ;;  %v122_v19 = vor.u32 %v121_v5, %v120_v11  ;;  %v142_v21 = vcvt.f32.s32 %v224_v45 }
  0x57   :  { %v135_v20 = vcvt.s32.f32 %v134_v13  ;;  %v115_v22 = vsel %vm246_vm6, %v114_v7, %v213_v38  ;;  %v130_v23 = vor.u32 %v129_v16, %v128_v15  ;;  %vm273_vm9 = vcmp.lt.f32.partialorder %v132_v9, 8388608.0 }
  0x58   :  { %v150_v25 = vcvt.f32.s32 %v226_v46  ;;  %v123_v26 = vsel %vm252_vm7, %v122_v19, %v215_v39  ;;  %v140_v28 = vand.u32 2147483647, %v224_v45  ;;  %v143_v29 = vcvt.s32.f32 %v142_v21 }
  0x59   :  { %v136_v27 = vand.u32 2147483647, %v135_v20  ;;  %v131_v30 = vsel %vm256_vm8, %v130_v23, %v217_v40  ;;  %v145_v31 = vand.u32 2147483648, %v224_v45  ;;  %v148_v32 = vand.u32 2147483647, %v226_v46 }
  0x5a   :  { %v151_v33 = vcvt.s32.f32 %v150_v25  ;;  %v144_v35 = vand.u32 2147483647, %v143_v29  ;;  %v70_v36 = vmul.f32 %v99_v14, %v178_v0  ;;  %v71_v37 = vmul.f32 %v107_v18, %v178_v0 }
  0x5b   :  { %v138_v34 = vor.u32 %v137_v17, %v136_v27  ;;  %v153_v39 = vand.u32 2147483648, %v226_v46  ;;  %v72_v42 = vmul.f32 %v115_v22, %v178_v0  ;;  %v73_v43 = vmul.f32 %v123_v26, %v178_v0 }
  0x5c   :  { %v152_v38 = vand.u32 2147483647, %v151_v33  ;;  %v146_v44 = vor.u32 %v145_v31, %v144_v35  ;;  %v74_v47 = vmul.f32 %v131_v30, %v178_v0  ;;  %78 = vst [vmem:[%s327_s2] sm:$0xff] %v70_v36  ;;  %vm141_vm10 = vcmp.lt.f32.partialorder %v140_v28, 8388608.0 }
  0x5d   :  { %v139_v40 = vsel %vm273_vm9, %v138_v34, %v219_v41  ;;  %79 = vst [vmem:[%s327_s2 + $0x8] sm:$0xff] %v71_v37  ;;  %vm149_vm11 = vcmp.lt.f32.partialorder %v148_v32, 8388608.0 }
  0x5e   :  { %v154_v48 = vor.u32 %v153_v39, %v152_v38  ;;  %v75_v49 = vmul.f32 %v139_v40, %v178_v0  ;;  %v147_v50 = vsel %vm141_vm10, %v146_v44, %v224_v45  ;;  %80 = vst [vmem:[%s327_s2 + $0x10] sm:$0xff] %v72_v42 }
  0x5f   :  { %v76_v51 = vmul.f32 %v147_v50, %v178_v0  ;;  %81 = vst [vmem:[%s327_s2 + $0x18] sm:$0xff] %v73_v43 }
  0x60   :  { %v155_v41 = vsel %vm149_vm11, %v154_v48, %v226_v46  ;;  %82 = vst [vmem:[%s327_s2 + $0x20] sm:$0xff] %v74_v47 }
  0x61   :  { %v77_v52 = vmul.f32 %v155_v41, %v178_v0  ;;  %83 = vst [vmem:[%s327_s2 + $0x28] sm:$0xff] %v75_v49 }
  0x62   :  { %84 = vst [vmem:[%s327_s2 + $0x30] sm:$0xff] %v76_v51 }
  0x63   :  { %85 = vst [vmem:[%s327_s2 + $0x38] sm:$0xff] %v77_v52 }

</bundles_post_ra>
